<compile_context>
chip_gen: v5e
topology: v5e:2x2
jax: 0.10.0
libtpu: 0.0.40
codegen_flags: <defaults>
</compile_context>

<pallas_src>
import functools

import jax
import jax.numpy as jnp
from jax.experimental import pallas as pl
from jax.experimental.pallas import tpu as pltpu


def _round_up(x, m):
    return ((x + m - 1) // m) * m


# ----------------------------------------------------------------------------
# Kernel: one batch tile per grid step; weights/biases stay VMEM-resident
# (constant index_map) across all grid steps.
# ----------------------------------------------------------------------------
def encoder_kernel(x_ref, w1_ref, b1_ref, wh_ref, bh_ref, out_ref):
    # h   = relu(x @ W1 + b1)                  : MXU matmul + VPU bias/relu
    # out = h @ [Wmu | Wvar] + [bmu | bvar]    : fused heads, one MXU matmul
    x = x_ref[...]
    h = jnp.dot(x, w1_ref[...], preferred_element_type=jnp.float32) + b1_ref[...]
    h = jnp.maximum(h, 0.0)
    out = jnp.dot(h, wh_ref[...], preferred_element_type=jnp.float32) + bh_ref[...]
    out_ref[...] = out.astype(out_ref.dtype)


# ----------------------------------------------------------------------------
# One-time parameter preparation (hoisted out of the per-call path).
# ----------------------------------------------------------------------------
def prepare_encoder_params(params):
    """Fuse mu/var heads into one [n_f, 2*n_z] weight and zero-pad widths to
    multiples of 128 (lane-dense MXU tiles, unmasked output stores).

    Padding is numerically exact: padded W1 columns / b1 entries are zero, so
    padded h lanes are exactly 0 after ReLU and contribute nothing to the
    fused head; padded output lanes are sliced off in the wrapper.
    """
    w1, b1, wmu, bmu, wvar, bvar = params
    n_in, n_f = w1.shape
    n_z = wmu.shape[1]

    n_f_pad = _round_up(n_f, 128)
    wide = _round_up(2 * n_z, 128)

    w1_p = jnp.zeros((n_in, n_f_pad), jnp.float32).at[:, :n_f].set(w1)
    b1_p = jnp.zeros((1, n_f_pad), jnp.float32).at[:, :n_f].set(b1.reshape(1, n_f))

    wh = jnp.concatenate([wmu, wvar], axis=1)                      # [n_f, 2*n_z]
    bh = jnp.concatenate([bmu.reshape(1, -1), bvar.reshape(1, -1)], axis=1)
    wh_p = jnp.zeros((n_f_pad, wide), jnp.float32).at[:n_f, :2 * n_z].set(wh)
    bh_p = jnp.zeros((1, wide), jnp.float32).at[:, :2 * n_z].set(bh)

    return {"w1": w1_p, "b1": b1_p, "wh": wh_p, "bh": bh_p, "n_z": n_z}


# ----------------------------------------------------------------------------
# VMEM footprint estimate (bytes) for the pipelined kernel.
# ----------------------------------------------------------------------------
def _vmem_bytes(tb, n_in, n_f_pad, wide):
    f32 = 4
    x_tile = tb * _round_up(n_in, 128) * f32          # lane-padded x tile
    out_tile = tb * wide * f32
    w1 = _round_up(n_in, 8) * n_f_pad * f32
    b1 = 8 * n_f_pad * f32
    wh = n_f_pad * wide * f32
    bh = 8 * wide * f32
    h = tb * n_f_pad * f32                            # intermediate between dots
    # Pallas double-buffers every BlockSpec operand by default (weights too).
    return 2 * (x_tile + out_tile + w1 + b1 + wh + bh) + h


# ----------------------------------------------------------------------------
# Forward wrapper.
# ----------------------------------------------------------------------------
@functools.partial(jax.jit, static_argnames=("n_z", "block_b"))
def encoder_forward(x, w1_p, b1_p, wh_p, bh_p, *, n_z, block_b=512):
    """x: [B, n_in] float32. Returns (mu, var), each [B, n_z]."""
    B, n_in = x.shape
    n_f_pad = w1_p.shape[1]
    wide = wh_p.shape[1]

    # Batch tile: multiple of 8 (f32 sublane); aim for >= 2 grid steps so the
    # "parallel" axis actually shards across v7x's two TensorCores.
    target = pl.cdiv(B, 2) if B > 8 else B
    tb = max(8, min(block_b, _round_up(target, 8)))

    # Shrink the tile if the working set would exceed a budget that is safe on
    # every generation (v7x has only 64 MiB physical VMEM).
    VMEM_BUDGET = 48 * 1024 * 1024
    while tb > 8 and _vmem_bytes(tb, n_in, n_f_pad, wide) > VMEM_BUDGET:
        tb = max(8, ((tb // 2) // 8) * 8)

    vmem_limit = int(_vmem_bytes(tb, n_in, n_f_pad, wide) * 1.3) + (1 << 20)
    vmem_limit = max(8 * 1024 * 1024, min(vmem_limit, VMEM_BUDGET))

    # Ragged last batch tile handled by Pallas -> no padded copy of x.
    grid = (pl.cdiv(B, tb),)

    out = pl.pallas_call(
        encoder_kernel,
        out_shape=jax.ShapeDtypeStruct((B, wide), jnp.float32),
        grid=grid,
        in_specs=[
            pl.BlockSpec((tb, n_in), lambda i: (i, 0)),        # x tile per step
            pl.BlockSpec((n_in, n_f_pad), lambda i: (0, 0)),   # resident weights
            pl.BlockSpec((1, n_f_pad), lambda i: (0, 0)),
            pl.BlockSpec((n_f_pad, wide), lambda i: (0, 0)),
            pl.BlockSpec((1, wide), lambda i: (0, 0)),
        ],
        out_specs=pl.BlockSpec((tb, wide), lambda i: (i, 0)),
        compiler_params=pltpu.CompilerParams(
            dimension_semantics=("parallel",),
            vmem_limit_bytes=vmem_limit,
        ),
    )(x, w1_p, b1_p, wh_p, bh_p)

    # Two return values are required by the module signature; the slices are
    # small ([B, n_z]) relative to the kernel's HBM traffic.
    mu = out[:, :n_z]
    var = out[:, n_z:2 * n_z]
    return mu, var


# ----------------------------------------------------------------------------
# Test harness.
# ----------------------------------------------------------------------------
def init_params(key, n_in, n_f, n_z):
    """Deterministic synthetic init (PyTorch-like uniform fan-in scaling)."""
    ks = jax.random.split(key, 6)

    def lin(kw, kb, fan_in, fan_out):
        bound = 1.0 / jnp.sqrt(fan_in)
        # stored as [in, out] (transposed vs. torch's [out, in])
        w = jax.random.uniform(kw, (fan_in, fan_out), jnp.float32, -bound, bound)
        b = jax.random.uniform(kb, (1, fan_out), jnp.float32, -bound, bound)
        return w, b

    w1, b1 = lin(ks[0], ks[1], n_in, n_f)
    wmu, bmu = lin(ks[2], ks[3], n_f, n_z)
    wvar, bvar = lin(ks[4], ks[5], n_f, n_z)
    return (w1, b1, wmu, bmu, wvar, bvar)


def encoder_ref(x, params):
    """Pure-JAX reference for correctness check."""
    w1, b1, wmu, bmu, wvar, bvar = params
    h = jnp.maximum(x @ w1 + b1, 0.0)
    return h @ wmu + bmu, h @ wvar + bvar


if __name__ == "__main__":
    key = jax.random.PRNGKey(0)
    n_in, n_f, n_z = 32, 64, 16
    batch = 8

    kx, kp = jax.random.split(key)
    x = jax.random.normal(kx, (batch, n_in), jnp.float32)
    params = init_params(kp, n_in, n_f, n_z)

    # One-time parameter prep (fusion + padding), cached/reused across calls.
    prep = prepare_encoder_params(params)
    jax.block_until_ready(prep)

    mu, var = encoder_forward(
        x, prep["w1"], prep["b1"], prep["wh"], prep["bh"], n_z=prep["n_z"]
    )
    jax.block_until_ready((mu, var))

    mu_ref, var_ref = encoder_ref(x, params)
    assert mu.shape == (batch, n_z) and var.shape == (batch, n_z)
    assert jnp.allclose(mu, mu_ref, atol=1e-5, rtol=1e-5)
    assert jnp.allclose(var, var_ref, atol=1e-5, rtol=1e-5)

    print("KERNEL_OK")
</pallas_src>

<mosaic_0001>
module attributes {stable_mosaic.version = 11 : i64} {
  func.func @encoder_kernel(%arg0: i32, %arg1: memref<8x32xf32, #tpu.memory_space<vmem>>, %arg2: memref<32x128xf32, #tpu.memory_space<vmem>>, %arg3: memref<1x128xf32, #tpu.memory_space<vmem>>, %arg4: memref<128x128xf32, #tpu.memory_space<vmem>>, %arg5: memref<1x128xf32, #tpu.memory_space<vmem>>, %arg6: memref<8x128xf32, #tpu.memory_space<vmem>>) attributes {dimension_semantics = [#tpu.dimension_semantics<parallel>], iteration_bounds = array<i64: 1>, scalar_prefetch = 0 : i64, scratch_operands = 0 : i64, tpu.core_type = #tpu.core_type<tc>, window_params = [{transform_indices = @transform_0, window_bounds = array<i64: 8, 32>}, {pipeline_mode = #tpu.pipeline_mode<synchronous>, transform_indices = @transform_1, window_bounds = array<i64: 32, 128>}, {pipeline_mode = #tpu.pipeline_mode<synchronous>, transform_indices = @transform_2, window_bounds = array<i64: 1, 128>}, {pipeline_mode = #tpu.pipeline_mode<synchronous>, transform_indices = @transform_3, window_bounds = array<i64: 128, 128>}, {pipeline_mode = #tpu.pipeline_mode<synchronous>, transform_indices = @transform_4, window_bounds = array<i64: 1, 128>}, {transform_indices = @transform_5, window_bounds = array<i64: 8, 128>}]} {
    %c0 = arith.constant 0 : index
    %c0_0 = arith.constant 0 : index
    %0 = vector.load %arg1[%c0, %c0_0] : memref<8x32xf32, #tpu.memory_space<vmem>>, vector<8x32xf32>
    %c0_1 = arith.constant 0 : index
    %c0_2 = arith.constant 0 : index
    %1 = vector.load %arg2[%c0_1, %c0_2] : memref<32x128xf32, #tpu.memory_space<vmem>>, vector<32x128xf32>
    %cst = arith.constant dense<0.000000e+00> : vector<8x128xf32>
    %2 = tpu.matmul %0, %1, %cst {dimension_numbers = #tpu.dot_dimension_numbers<[1], [0], [0], [1], [0, 0, 1, 1], [], []>} : vector<8x32xf32>, vector<32x128xf32>, vector<8x128xf32> -> vector<8x128xf32>
    %c0_3 = arith.constant 0 : index
    %c0_4 = arith.constant 0 : index
    %3 = vector.load %arg3[%c0_3, %c0_4] : memref<1x128xf32, #tpu.memory_space<vmem>>, vector<1x128xf32>
    %4 = vector.broadcast %3 : vector<1x128xf32> to vector<8x128xf32>
    %5 = arith.addf %2, %4 : vector<8x128xf32>
    %cst_5 = arith.constant 0.000000e+00 : f32
    %6 = vector.broadcast %cst_5 : f32 to vector<8x128xf32>
    %7 = arith.maximumf %5, %6 : vector<8x128xf32>
    %c0_6 = arith.constant 0 : index
    %c0_7 = arith.constant 0 : index
    %8 = vector.load %arg4[%c0_6, %c0_7] : memref<128x128xf32, #tpu.memory_space<vmem>>, vector<128x128xf32>
    %cst_8 = arith.constant dense<0.000000e+00> : vector<8x128xf32>
    %9 = tpu.matmul %7, %8, %cst_8 {dimension_numbers = #tpu.dot_dimension_numbers<[1], [0], [0], [1], [0, 0, 1, 1], [], []>} : vector<8x128xf32>, vector<128x128xf32>, vector<8x128xf32> -> vector<8x128xf32>
    %c0_9 = arith.constant 0 : index
    %c0_10 = arith.constant 0 : index
    %10 = vector.load %arg5[%c0_9, %c0_10] : memref<1x128xf32, #tpu.memory_space<vmem>>, vector<1x128xf32>
    %11 = vector.broadcast %10 : vector<1x128xf32> to vector<8x128xf32>
    %12 = arith.addf %9, %11 : vector<8x128xf32>
    %c0_11 = arith.constant 0 : index
    %c0_12 = arith.constant 0 : index
    %13 = vector.load %arg6[%c0_11, %c0_12] : memref<8x128xf32, #tpu.memory_space<vmem>>, vector<8x128xf32>
    tpu.vector_store %arg6[%c0_11, %c0_12], %12 {strides = array<i32>} : memref<8x128xf32, #tpu.memory_space<vmem>>, vector<8x128xf32>,
    return
  }
  func.func @transform_0(%arg0: i32) -> (i32, i32) {
    %c0_i32 = arith.constant 0 : i32
    %c0_i32_0 = arith.constant 0 : i32
    return %arg0, %c0_i32 : i32, i32
  }
  func.func @transform_1(%arg0: i32) -> (i32, i32) {
    %c0_i32 = arith.constant 0 : i32
    %c0_i32_0 = arith.constant 0 : i32
    %c0_i32_1 = arith.constant 0 : i32
    return %c0_i32, %c0_i32_0 : i32, i32
  }
  func.func @transform_2(%arg0: i32) -> (i32, i32) {
    %c0_i32 = arith.constant 0 : i32
    %c0_i32_0 = arith.constant 0 : i32
    %c0_i32_1 = arith.constant 0 : i32
    return %c0_i32, %c0_i32_0 : i32, i32
  }
  func.func @transform_3(%arg0: i32) -> (i32, i32) {
    %c0_i32 = arith.constant 0 : i32
    %c0_i32_0 = arith.constant 0 : i32
    %c0_i32_1 = arith.constant 0 : i32
    return %c0_i32, %c0_i32_0 : i32, i32
  }
  func.func @transform_4(%arg0: i32) -> (i32, i32) {
    %c0_i32 = arith.constant 0 : i32
    %c0_i32_0 = arith.constant 0 : i32
    %c0_i32_1 = arith.constant 0 : i32
    return %c0_i32, %c0_i32_0 : i32, i32
  }
  func.func @transform_5(%arg0: i32) -> (i32, i32) {
    %c0_i32 = arith.constant 0 : i32
    %c0_i32_0 = arith.constant 0 : i32
    return %arg0, %c0_i32 : i32, i32
  }
}

</mosaic_0001>

<bundles_post_ra>
// kernel: encoder_forward.1
= control target key start
LH: loop header
LB: loop body
LE: loop exit
PB: predicated region body
PF: predicated region fallthrough
CT: control target
= control target key end

     0   :  { %10 = vsyncpa [#allocation3], 0  ;;  %s283_s0 = inlined_call_operand.hbm [shape: f32[8,32], index: 0, kind: input, shape index: {}]   ;;  %s284_s1 = inlined_call_operand.hbm [shape: f32[32,128], index: 1, kind: input, shape index: {}]   ;;  %s285_s2 = inlined_call_operand.vmem [shape: f32[1,128], index: 2, kind: input, shape index: {}]   ;;  %s286_s3 = inlined_call_operand.hbm [shape: f32[128,128], index: 3, kind: input, shape index: {}]   ;;  %s287_s4 = inlined_call_operand.vmem [shape: f32[1,128], index: 4, kind: input, shape index: {}]   ;;  %s288_s5 = inlined_call_operand.vmem [shape: f32[8,128], index: 5, kind: output, shape index: {}]  }
   0x1   :  { %11 = vsyncpa [#allocation5], 0  ;;  %s27_s20 = sshll.u32 %s284_s1, 4  ;;  %s230_s21 = smov [#allocation4]   ;;  %s28_s20 = int_to_ptr.hbm [resolvable:$true] %s27_s20 }
   0x2   :  { %s29_s22 = sshll.u32 %s230_s21, 4  ;;  %s17_s25 = sshll.u32 %s283_s0, 4  ;;  %s30_s22 = int_to_ptr.vmem [resolvable:$true] %s29_s22  ;;  %s18_s25 = int_to_ptr.hbm [resolvable:$true] %s17_s25 }
   0x3   :  { %s231_s26 = smov 128   ;;  %s232_s27 = smov 8  }
   0x4   :  { %35 = dma.hbm_to_vmem [thread:$0]  %s28_s20, 512, %s30_s22, [#allocation5], %s231_s26, %s231_s26, %s232_s27  }
   0x5   :  { %s233_s28 = smov [#allocation2]   ;;  %s42_s7 = sshll.u32 %s286_s3, 4  ;;  %s43_s7 = int_to_ptr.hbm [resolvable:$true] %s42_s7 }
   0x6   :  { %s19_s29 = sshll.u32 %s233_s28, 4  ;;  %s234_s1 = smov [#allocation6]   ;;  %s20_s29 = int_to_ptr.vmem [resolvable:$true] %s19_s29 }
   0x7   :  { %22 = dma.hbm_to_vmem [thread:$0]  %s18_s25, 128, %s20_s29, [#allocation3]  }
   0x8   :  { %s44_s8 = sshll.u32 %s234_s1, 4  ;;  %s45_s8 = int_to_ptr.vmem [resolvable:$true] %s44_s8 }
   0x9   :  { %50 = dma.hbm_to_vmem [thread:$0]  %s43_s7, 2048, %s45_s8, [#allocation5], %s231_s26, %s231_s26, %s232_s27  }
   0xa   :  { %226 = dma.done.wait [#allocation3], 128  }
   0xb   :  { %227 = vsyncadd [#allocation3], 4294967168 }
   0xc   :  { %228 = dma.done.wait [#allocation5], 2560  }
   0xd   :  { %229 = vsyncadd [#allocation5], 4294964736  ;;  %v69_v0 = vld [vmem:[#allocation4 + $0x18] sm:$0xff]  ;;  %v68_v1 = vld [vmem:[#allocation4 + $0x10] sm:$0xff]  ;;  %vm74_vm0 = vcmask 261120  }
   0xe   :  { %90 = vmatpush.msra.mxu0 %v69_v0  ;;  %v114_v2 = vld [vmem:[#allocation6 + $0x78] sm:$0xff]  ;;  %v67_v3 = vld [vmem:[#allocation4 + $0x8] sm:$0xff]  ;;  %v113_v4 = vld [vmem:[#allocation6 + $0x70] sm:$0xff] }
   0xf   :  { %119 = vmatpush.msra.mxu1 %v114_v2  ;;  %v112_v5 = vld [vmem:[#allocation6 + $0x68] sm:$0xff]  ;;  %v66_v6 = vld [vmem:[#allocation4] sm:$0xff]  ;;  %v65_v7 = vld [vmem:[#allocation2] sm:$0xff] }
  0x10   :  { %91 = vmatpush.msra.mxu0 %v68_v1  ;;  %v111_v8 = vld [vmem:[#allocation6 + $0x60] sm:$0xff]  ;;  %v110_v9 = vld [vmem:[#allocation6 + $0x58] sm:$0xff]  ;;  %v109_v10 = vld [vmem:[#allocation6 + $0x50] sm:$0xff] }
  0x11   :  { %120 = vmatpush.msra.mxu1 %v113_v4  ;;  %v108_v11 = vld [vmem:[#allocation6 + $0x48] sm:$0xff]  ;;  %v107_v12 = vld [vmem:[#allocation6 + $0x40] sm:$0xff]  ;;  %v106_v13 = vld [vmem:[#allocation6 + $0x38] sm:$0xff] }
  0x12   :  { %92 = vmatpush.msra.mxu0 %v67_v3  ;;  %v105_v14 = vld [vmem:[#allocation6 + $0x30] sm:$0xff]  ;;  %v104_v15 = vld [vmem:[#allocation6 + $0x28] sm:$0xff]  ;;  %v103_v16 = vld [vmem:[#allocation6 + $0x20] sm:$0xff] }
  0x13   :  { %121 = vmatpush.msra.mxu1 %v112_v5  ;;  %v102_v17 = vld [vmem:[#allocation6 + $0x18] sm:$0xff]  ;;  %v101_v18 = vld [vmem:[#allocation6 + $0x10] sm:$0xff]  ;;  %v100_v19 = vld [vmem:[#allocation6 + $0x8] sm:$0xff] }
  0x14   :  { %93 = vmatpush.msra.mxu0 %v66_v6  ;;  %v99_v20 = vld [vmem:[#allocation6] sm:$0xff]  ;;  %v152_v21 = vld [vmem:[%s285_s2] ss:$0 sm:$0xff] }
  0x15   :  { %146 = vmatmul.msk.f32.vlgmr.msra.gmra.mxu0 %vm74_vm0, %v65_v7  ;;  %122 = vmatpush.msra.mxu1 %v111_v8  ;;  %v153_v25 = vld [vmem:[%s287_s4] ss:$0 sm:$0xff] }
  0x17   :  { %123 = vmatpush.msra.mxu1 %v110_v9 }
  0x19   :  { %124 = vmatpush.msra.mxu1 %v109_v10 }
  0x1b   :  { %125 = vmatpush.msra.mxu1 %v108_v11 }
  0x1d   :  { %126 = vmatpush.msra.mxu1 %v107_v12 }
  0x1f   :  { %127 = vmatpush.msra.mxu1 %v106_v13 }
  0x21   :  { %128 = vmatpush.msra.mxu1 %v105_v14 }
  0x23   :  { %129 = vmatpush.msra.mxu1 %v104_v15 }
  0x25   :  { %130 = vmatpush.msra.mxu1 %v103_v16 }
  0x27   :  { %131 = vmatpush.msra.mxu1 %v102_v17 }
  0x29   :  { %132 = vmatpush.msra.mxu1 %v101_v18 }
  0x2b   :  { %133 = vmatpush.msra.mxu1 %v100_v19 }
  0x2d   :  { %134 = vmatpush.msra.mxu1 %v99_v20 }
  0x92   :  { %v95_v22 = vpop.f32.mrf.mxu0 }
  0x93   :  { %v96_v23 = vadd.f32 %v152_v21, %v95_v22 }
  0x95   :  { %v98_v24 = vmax.f32 %v96_v23, 0.0 }
  0x97   :  { %135 = vmatmul.f32.vlgmr.msra.gmra.mxu1 %v98_v24 }
 0x114   :  { %v136_v26 = vpop.f32.mrf.mxu1 }
 0x115   :  { %v137_v27 = vadd.f32 %v153_v25, %v136_v26 }
 0x117   :  { %139 = vst [vmem:[%s288_s5] sm:$0xff] %v137_v27 }
 0x118   :  { %144 = vsyncpa [#allocation3], 1 }
 0x119   :  { %145 = vsyncpa [#allocation5], 1 }

</bundles_post_ra>
